<compile_context>
chip_gen: v7x
topology: tpu7x:2x2x1
jax: 0.10.0
libtpu: 0.0.40
codegen_flags: <defaults>
</compile_context>

<pallas_src>
import functools

import jax
import jax.numpy as jnp
from jax.experimental import pallas as pl
from jax.experimental.pallas import tpu as pltpu


# ---------------- generation-aware byte budgets ------------------------------

def _device_kind():
    try:
        return jax.devices()[0].device_kind.lower()
    except Exception:
        return ""


def _tpu_budget():
    """(target bytes of x per block, vmem_limit_bytes) for the local TPU gen."""
    kind = _device_kind()
    if "v7" in kind:
        # ~3.2 TB/s HBM/TC but only 64 MiB physical VMEM: big tiles, tight cap
        # (2 in-bufs + 2 out-bufs ~= 4x tile must stay well under physical).
        return 8 << 20, 40 << 20
    if "v6" in kind or "v5" in kind:
        # 128 MiB physical VMEM; raise the 16/32 MiB scoped defaults.
        return 4 << 20, 64 << 20
    # Unknown chip (v4, interpret mode, ...): conservative.
    return 4 << 20, 40 << 20


def _num_tensorcores():
    return 2 if "v7" in _device_kind() else 1


# ---------------- tile selection ----------------------------------------------

def _pick_row_tile(rows, row_bytes, target_bytes, min_steps):
    """TM with TM % 8 == 0 (or TM == rows), ~target bytes per block, and at
    least `min_steps` row blocks when rows allow it (megacore sharding)."""
    if rows <= 8:
        return rows
    tm = max(8, target_bytes // max(1, row_bytes))
    if min_steps > 1 and rows >= 8 * min_steps:
        tm = min(tm, max(8, rows // min_steps))
    tm = min(tm, rows)
    tm = max(8, (tm // 8) * 8)
    return rows if tm >= rows else tm


def _pick_col_tile(hw, tm, elem_bytes, target_bytes):
    """TN (multiple of 128, or full hw) so one block holds ~target bytes of x."""
    if hw <= 128 or tm * hw * elem_bytes <= target_bytes:
        return hw
    tn = target_bytes // max(1, tm * elem_bytes)
    tn = max(128, (tn // 128) * 128)
    return hw if tn >= hw else tn


# ---------------- kernel ------------------------------------------------------

def _normalize_kernel(tm, mean_ref, scale_ref, x_ref, o_ref):
    # mean_ref / scale_ref: full (rows_padded, 1) f32 tables, VMEM-resident
    #   (constant index_map => fetched once, no per-step DMA).
    # x_ref / o_ref:        (TM, TN) tiles of the flattened (N*C, H*W) array.
    r0 = pl.program_id(0) * tm
    if tm % 8 == 0:
        r0 = pl.multiple_of(r0, tm)
    m = mean_ref[pl.ds(r0, tm), :]      # (TM, 1) per-row mean
    s = scale_ref[pl.ds(r0, tm), :]     # (TM, 1) per-row 1/std
    x = x_ref[...].astype(jnp.float32)
    o_ref[...] = ((x - m) * s).astype(o_ref.dtype)


# ---------------- wrapper -----------------------------------------------------

def normalize_by_channel_mean_std(x, mean, std, *, donate_input=False):
    """Pallas equivalent of normalize_fn(tensor, mean, std) for NCHW input."""
    N, C, H, W = x.shape
    rows, hw = N * C, H * W
    elem_bytes = x.dtype.itemsize

    target_x_bytes, vmem_limit = _tpu_budget()
    min_row_steps = 4 if _num_tensorcores() > 1 else 1

    tm = _pick_row_tile(rows, hw * elem_bytes, target_x_bytes, min_row_steps)
    tn = _pick_col_tile(hw, tm, elem_bytes, target_x_bytes)

    row_steps = pl.cdiv(rows, tm)
    col_steps = pl.cdiv(hw, tn)
    rows_padded = row_steps * tm

    # Per-row f32 tables: mean and 1/std (C-sized precompute, trivial cost),
    # expanded to (N*C, 1) and padded so the in-kernel slice of the last
    # (possibly partial) row block never reads out of bounds.
    mean_f32 = mean.astype(jnp.float32)
    inv_std = 1.0 / std.astype(jnp.float32)
    mean_rows = jnp.broadcast_to(mean_f32[None, :], (N, C)).reshape(rows, 1)
    scale_rows = jnp.broadcast_to(inv_std[None, :], (N, C)).reshape(rows, 1)
    pad = rows_padded - rows
    if pad:
        mean_rows = jnp.pad(mean_rows, ((0, pad), (0, 0)))
        scale_rows = jnp.pad(scale_rows, ((0, pad), (0, 0)), constant_values=1.0)

    # Free reshape for contiguous NCHW; lane axis = H*W (lane-dense stores).
    x2d = x.reshape(rows, hw)

    kernel = functools.partial(_normalize_kernel, tm)

    out2d = pl.pallas_call(
        kernel,
        out_shape=jax.ShapeDtypeStruct((rows, hw), x.dtype),
        grid=(row_steps, col_steps),
        in_specs=[
            pl.BlockSpec((rows_padded, 1), lambda i, j: (0, 0)),  # mean table
            pl.BlockSpec((rows_padded, 1), lambda i, j: (0, 0)),  # 1/std table
            pl.BlockSpec((tm, tn), lambda i, j: (i, j)),          # x tile
        ],
        out_specs=pl.BlockSpec((tm, tn), lambda i, j: (i, j)),
        compiler_params=pltpu.CompilerParams(
            dimension_semantics=("parallel", "parallel"),
            vmem_limit_bytes=vmem_limit,
        ),
        input_output_aliases=({2: 0} if donate_input else {}),
    )(mean_rows, scale_rows, x2d)

    return out2d.reshape(N, C, H, W)


if __name__ == "__main__":
    key = jax.random.PRNGKey(0)
    N, C, H, W = 2, 4, 16, 16

    kx, km, ks = jax.random.split(key, 3)
    x = jax.random.normal(kx, (N, C, H, W), dtype=jnp.float32)
    # Deterministic per-channel buffers (analogous to CIFAR mean/std buffers).
    mean = jax.random.uniform(km, (C,), dtype=jnp.float32, minval=0.3, maxval=0.7)
    std = jax.random.uniform(ks, (C,), dtype=jnp.float32, minval=0.1, maxval=0.4)

    out = jax.block_until_ready(normalize_by_channel_mean_std(x, mean, std))

    # Reference: true subtract + divide (PyTorch normalize_fn semantics).
    ref = (x - mean[None, :, None, None]) / std[None, :, None, None]
    assert out.shape == x.shape and out.dtype == x.dtype
    # Kernel multiplies by reciprocal; allow last-ulp-level differences.
    assert jnp.allclose(out, ref, atol=1e-5, rtol=1e-5)

    print("KERNEL_OK")
</pallas_src>

<mosaic_0001>
module attributes {stable_mosaic.version = 11 : i64} {
  func.func @_normalize_kernel(%arg0: i32, %arg1: i32, %arg2: memref<8x1xf32, #tpu.memory_space<vmem>>, %arg3: memref<8x1xf32, #tpu.memory_space<vmem>>, %arg4: memref<8x256xf32, #tpu.memory_space<vmem>>, %arg5: memref<8x256xf32, #tpu.memory_space<vmem>>) attributes {dimension_semantics = [#tpu.dimension_semantics<parallel>, #tpu.dimension_semantics<parallel>], iteration_bounds = array<i64: 1, 1>, scalar_prefetch = 0 : i64, scratch_operands = 0 : i64, tpu.core_type = #tpu.core_type<tc>, window_params = [{pipeline_mode = #tpu.pipeline_mode<synchronous>, transform_indices = @transform_0, window_bounds = array<i64: 8, 1>}, {pipeline_mode = #tpu.pipeline_mode<synchronous>, transform_indices = @transform_1, window_bounds = array<i64: 8, 1>}, {transform_indices = @transform_2, window_bounds = array<i64: 8, 256>}, {transform_indices = @transform_3, window_bounds = array<i64: 8, 256>}]} {
    %c8_i32 = arith.constant 8 : i32
    %0 = arith.muli %arg0, %c8_i32 : i32
    %1 = tpu.assume_multiple %0, 8 : i32
    %2 = arith.index_cast %1 : i32 to index
    %c0 = arith.constant 0 : index
    %3 = vector.load %arg2[%2, %c0] : memref<8x1xf32, #tpu.memory_space<vmem>>, vector<8x1xf32>
    %4 = arith.index_cast %1 : i32 to index
    %c0_0 = arith.constant 0 : index
    %5 = vector.load %arg3[%4, %c0_0] : memref<8x1xf32, #tpu.memory_space<vmem>>, vector<8x1xf32>
    %c0_1 = arith.constant 0 : index
    %c0_2 = arith.constant 0 : index
    %6 = vector.load %arg4[%c0_1, %c0_2] : memref<8x256xf32, #tpu.memory_space<vmem>>, vector<8x256xf32>
    %7 = vector.broadcast %3 : vector<8x1xf32> to vector<8x256xf32>
    %8 = arith.subf %6, %7 : vector<8x256xf32>
    %9 = vector.broadcast %5 : vector<8x1xf32> to vector<8x256xf32>
    %10 = arith.mulf %8, %9 : vector<8x256xf32>
    %c0_3 = arith.constant 0 : index
    %c0_4 = arith.constant 0 : index
    %11 = vector.load %arg5[%c0_3, %c0_4] : memref<8x256xf32, #tpu.memory_space<vmem>>, vector<8x256xf32>
    tpu.vector_store %arg5[%c0_3, %c0_4], %10 {strides = array<i32>} : memref<8x256xf32, #tpu.memory_space<vmem>>, vector<8x256xf32>,
    return
  }
  func.func @transform_0(%arg0: i32, %arg1: i32) -> (i32, i32) {
    %c0_i32 = arith.constant 0 : i32
    %c0_i32_0 = arith.constant 0 : i32
    %c0_i32_1 = arith.constant 0 : i32
    return %c0_i32, %c0_i32_0 : i32, i32
  }
  func.func @transform_1(%arg0: i32, %arg1: i32) -> (i32, i32) {
    %c0_i32 = arith.constant 0 : i32
    %c0_i32_0 = arith.constant 0 : i32
    %c0_i32_1 = arith.constant 0 : i32
    return %c0_i32, %c0_i32_0 : i32, i32
  }
  func.func @transform_2(%arg0: i32, %arg1: i32) -> (i32, i32) {
    %c0_i32 = arith.constant 0 : i32
    return %arg0, %arg1 : i32, i32
  }
  func.func @transform_3(%arg0: i32, %arg1: i32) -> (i32, i32) {
    %c0_i32 = arith.constant 0 : i32
    return %arg0, %arg1 : i32, i32
  }
}

</mosaic_0001>

<bundles_post_ra>
// kernel: tpu_custom_call.1
= control target key start
LH: loop header
LB: loop body
LE: loop exit
PB: predicated region body
PF: predicated region fallthrough
CT: control target
= control target key end

     0   :  { %v79_v1 = vmov 0   ;;  %s125_s0 = inlined_call_operand.vmem [shape: f32[8,1], index: 0, kind: input, shape index: {}]   ;;  %s126_s1 = inlined_call_operand.vmem [shape: f32[8,1], index: 1, kind: input, shape index: {}]   ;;  %s127_s2 = inlined_call_operand.vmem [shape: f32[8,256], index: 2, kind: input, shape index: {}]   ;;  %s128_s3 = inlined_call_operand.hbm [shape: f32[8,256], index: 3, kind: output, shape index: {}]  }
   0x1   :  { %v17_v0 = vld [vmem:[%s125_s0] sm:$0xff]  ;;  %54 = vset.pattern.permute.xlu0 %v79_v1 }
   0x2   :  { %8 = vsyncpa [#allocation3], 0  ;;  %24 = vperm.xlu0 %54, %v17_v0   ;;  %v19_v2 = vld [vmem:[%s126_s1] sm:$0xff]  ;;  %v21_v4 = vld [vmem:[%s127_s2 + $0x8] sm:$0xff]  ;;  %s80_s20 = smov [#allocation2]  }
   0x3   :  { %v20_v3 = vld [vmem:[%s127_s2] sm:$0xff]  ;;  %s44_s0 = sshll.u32 %s80_s20, 4  ;;  %s45_s0 = int_to_ptr.vmem [resolvable:$true] %s44_s0 }
   0x4   :  { %s55_s1 = scalar_lea.vmem %s45_s0, 256  ;;  %p60_p1 = scmp.lt.s32.totalorder %s45_s0, %s45_s0 }
   0x5   :  { %p56_p0 = scmp.ne.s32.totalorder %s45_s0, %s55_s1  ;;  %p61_p2 = scmp.lt.s32.totalorder %s55_s1, %s55_s1 }
   0x6   :  { %31 = vperm.xlu0 %54, %v19_v2  }
   0x7   :  { %p62_p3 = por %p61_p2, %p60_p1 }
   0x9   :  { %p63_p4 = pnand %p62_p3, %p56_p0 }
  0x81   :  { %v25_v5 = vpop.permute.xlu0 %24 }
  0x82   :  { %v27_v6 = vsub.f32 %v20_v3, %v25_v5  ;;  %v28_v7 = vsub.f32 %v21_v4, %v25_v5 }
  0x85   :  { %v32_v8 = vpop.permute.xlu0 %31 }
  0x86   :  { %v34_v9 = vmul.f32 %v32_v8, %v27_v6  ;;  %v35_v10 = vmul.f32 %v32_v8, %v28_v7 }
  0x88   :  { %36 = vst [vmem:[#allocation2] sm:$0xff] %v34_v9  ;;  %37 = vst [vmem:[#allocation2 + $0x8] sm:$0xff] %v35_v10 }
  0x89   :  { %66 = shalt.err (!%p63_p4)
}
  0x8a   :  { %s67_s22 = scalar_lea.hbm %s128_s3, 256 }
  0x8b   :  { %p68_p5 = scmp.ne.s32.totalorder %s128_s3, %s67_s22  ;;  %p71_p6 = scmp.lt.u32.totalorder %s67_s22, %s128_s3 }
  0x8d   :  { %p73_p7 = pnand %p71_p6, %p68_p5 }
  0x8f   :  { %76 = shalt.err (!%p73_p7)
}
  0x90   :  { %47 = dma.vmem_to_hbm [thread:$0]  %s45_s0, 256, %s128_s3, [#allocation3]  }
  0x91   :  { %77 = dma.done.wait [#allocation3], 256  }
  0x92   :  { %78 = vsyncadd [#allocation3], 4294967040 }
  0x93   :  { %51 = vsyncpa [#allocation3], 1 }

</bundles_post_ra>
